<compile_context>
chip_gen: v6e
topology: v6e:2x2x1
jax: 0.10.0
libtpu: 0.0.40
codegen_flags: <defaults>
</compile_context>

<pallas_src>
import math

import jax
import jax.numpy as jnp
from jax.experimental import pallas as pl
from jax.experimental.pallas import tpu as pltpu

HIDDEN = 128  # l1 output width (lane-dense)


def _round_up(n, m):
    return ((n + m - 1) // m) * m


def policy_net_kernel(x_ref, w1_ref, b1_ref, w2_ref, b2_ref, out_ref):
    # x_ref:   (tile_b, 4)   f32 (cast to MXU dtype in-kernel)
    # w1_ref:  (4, 128)      compute dtype (VMEM-resident)
    # b1_ref:  (1, 128)      f32           (VMEM-resident)
    # w2_ref:  (128, A)      compute dtype (VMEM-resident)
    # b2_ref:  (1, A)        f32           (VMEM-resident)
    # out_ref: (tile_b, A)   f32  -- narrow store (masked vst) but only A/128
    #                                of the HBM bytes of a 128-lane layout.
    x = x_ref[...].astype(w1_ref.dtype)
    # l1 + ReLU: MXU matmul with f32 accumulation; elementwise stays f32.
    h = jnp.dot(x, w1_ref[...], preferred_element_type=jnp.float32)
    h = jnp.maximum(h + b1_ref[...], 0.0)
    # l2: feed MXU in the weights' dtype (bf16 or f32), accumulate f32.
    logits = jnp.dot(h.astype(w2_ref.dtype), w2_ref[...],
                     preferred_element_type=jnp.float32)
    out_ref[...] = (logits + b2_ref[...]).astype(out_ref.dtype)


def prepare_policy_net_params(w1, b1, w2, b2, *, compute_dtype=jnp.bfloat16):
    """One-time parameter prep (hoisted out of the per-call hot path).

    Weights are cast to `compute_dtype` (bf16 keeps v5e's MXU at full rate and
    halves weight traffic everywhere); biases stay f32 and are reshaped to
    (1, width) so the kernel broadcast-adds them directly."""
    return (w1.astype(compute_dtype),
            b1.reshape(1, -1).astype(jnp.float32),
            w2.astype(compute_dtype),
            b2.reshape(1, -1).astype(jnp.float32))


def _choose_tile_b(batch, tile_b_max):
    tile_b = min(tile_b_max, _round_up(batch, 8))
    # v7x megacore: for large single-tile batches, split into >= 2 grid steps
    # so the "parallel" batch axis can occupy both TensorCores (harmless on
    # v5e/v6e, where the grid just runs sequentially).
    if pl.cdiv(batch, tile_b) == 1 and tile_b >= 2048:
        tile_b = _round_up(pl.cdiv(tile_b, 2), 8)
    return tile_b


def policy_net_forward(x, params, *, tile_b_max=8192):
    """x: (B, 4) float32.  params: output of prepare_policy_net_params.

    Returns logits (B, action_size) in float32."""
    w1, b1, w2, b2 = params
    B, in_f = x.shape
    A = w2.shape[1]

    tile_b = _choose_tile_b(B, tile_b_max)
    grid = (pl.cdiv(B, tile_b),)

    cost = pl.CostEstimate(
        flops=2 * B * (in_f * HIDDEN + HIDDEN * A),
        transcendentals=0,
        bytes_accessed=(x.size * x.dtype.itemsize
                        + B * A * 4
                        + w1.size * w1.dtype.itemsize + b1.size * 4
                        + w2.size * w2.dtype.itemsize + b2.size * 4),
    )

    return pl.pallas_call(
        policy_net_kernel,
        out_shape=jax.ShapeDtypeStruct((B, A), jnp.float32),
        grid=grid,
        in_specs=[
            pl.BlockSpec((tile_b, in_f), lambda i: (i, 0)),   # x: streamed
            pl.BlockSpec((in_f, HIDDEN), lambda i: (0, 0)),   # w1: resident
            pl.BlockSpec((1, HIDDEN), lambda i: (0, 0)),      # b1: resident
            pl.BlockSpec((HIDDEN, A), lambda i: (0, 0)),      # w2: resident
            pl.BlockSpec((1, A), lambda i: (0, 0)),           # b2: resident
        ],
        out_specs=pl.BlockSpec((tile_b, A), lambda i: (i, 0)),
        compiler_params=pltpu.CompilerParams(
            dimension_semantics=("parallel",)),
        cost_estimate=cost,
    )(x, w1, b1, w2, b2)


def init_policy_net_params(key, action_size):
    """torch.nn.Linear-style init (U[-1/sqrt(fan_in), 1/sqrt(fan_in)]).

    Weights stored as (in_features, out_features)."""
    k1, k2, k3, k4 = jax.random.split(key, 4)
    in1, out1 = 4, 128
    in2, out2 = 128, action_size
    bound1 = 1.0 / math.sqrt(in1)
    bound2 = 1.0 / math.sqrt(in2)
    w1 = jax.random.uniform(k1, (in1, out1), jnp.float32, -bound1, bound1)
    b1 = jax.random.uniform(k2, (out1,), jnp.float32, -bound1, bound1)
    w2 = jax.random.uniform(k3, (in2, out2), jnp.float32, -bound2, bound2)
    b2 = jax.random.uniform(k4, (out2,), jnp.float32, -bound2, bound2)
    return w1, b1, w2, b2


def reference_forward(x, w1, b1, w2, b2):
    h = jnp.maximum(x @ w1 + b1, 0.0)
    return h @ w2 + b2


if __name__ == "__main__":
    key = jax.random.PRNGKey(0)
    k_params, k_x, k_x2 = jax.random.split(key, 3)

    action_size = 2  # e.g. CartPole
    w1, b1, w2, b2 = init_policy_net_params(k_params, action_size)

    # f32 compute path: bit-exact vs. the pure-JAX reference.
    params_f32 = prepare_policy_net_params(w1, b1, w2, b2,
                                           compute_dtype=jnp.float32)

    batch = 2
    x = jax.random.normal(k_x, (batch, 4), jnp.float32)
    logits = jax.block_until_ready(policy_net_forward(x, params_f32))
    ref = reference_forward(x, w1, b1, w2, b2)
    assert logits.shape == (batch, action_size)
    assert jnp.allclose(logits, ref, atol=1e-5, rtol=1e-5)

    # Non-multiple-of-8 batch exercises the clipped (ragged) last block.
    batch2 = 33
    x2 = jax.random.normal(k_x2, (batch2, 4), jnp.float32)
    logits2 = jax.block_until_ready(policy_net_forward(x2, params_f32))
    ref2 = reference_forward(x2, w1, b1, w2, b2)
    assert logits2.shape == (batch2, action_size)
    assert jnp.allclose(logits2, ref2, atol=1e-5, rtol=1e-5)

    # Default bf16 matmul path (f32 accumulation): looser tolerance expected.
    params_bf16 = prepare_policy_net_params(w1, b1, w2, b2)
    logits3 = jax.block_until_ready(policy_net_forward(x2, params_bf16))
    assert logits3.shape == (batch2, action_size)
    assert jnp.allclose(logits3, ref2, atol=1e-1, rtol=5e-2)

    print("KERNEL_OK")
</pallas_src>

<mosaic_0001>
module attributes {stable_mosaic.version = 11 : i64} {
  func.func @policy_net_kernel(%arg0: i32, %arg1: memref<8x4xf32, #tpu.memory_space<vmem>>, %arg2: memref<4x128xf32, #tpu.memory_space<vmem>>, %arg3: memref<1x128xf32, #tpu.memory_space<vmem>>, %arg4: memref<128x2xf32, #tpu.memory_space<vmem>>, %arg5: memref<1x2xf32, #tpu.memory_space<vmem>>, %arg6: memref<8x2xf32, #tpu.memory_space<vmem>>) attributes {dimension_semantics = [#tpu.dimension_semantics<parallel>], iteration_bounds = array<i64: 1>, scalar_prefetch = 0 : i64, scratch_operands = 0 : i64, tpu.core_type = #tpu.core_type<tc>, window_params = [{transform_indices = @transform_0, window_bounds = array<i64: 8, 4>}, {pipeline_mode = #tpu.pipeline_mode<synchronous>, transform_indices = @transform_1, window_bounds = array<i64: 4, 128>}, {pipeline_mode = #tpu.pipeline_mode<synchronous>, transform_indices = @transform_2, window_bounds = array<i64: 1, 128>}, {pipeline_mode = #tpu.pipeline_mode<synchronous>, transform_indices = @transform_3, window_bounds = array<i64: 128, 2>}, {pipeline_mode = #tpu.pipeline_mode<synchronous>, transform_indices = @transform_4, window_bounds = array<i64: 1, 2>}, {transform_indices = @transform_5, window_bounds = array<i64: 8, 2>}]} {
    %c0 = arith.constant 0 : index
    %c0_0 = arith.constant 0 : index
    %0 = vector.load %arg1[%c0, %c0_0] : memref<8x4xf32, #tpu.memory_space<vmem>>, vector<8x4xf32>
    %c0_1 = arith.constant 0 : index
    %c0_2 = arith.constant 0 : index
    %1 = vector.load %arg2[%c0_1, %c0_2] : memref<4x128xf32, #tpu.memory_space<vmem>>, vector<4x128xf32>
    %cst = arith.constant dense<0.000000e+00> : vector<8x128xf32>
    %2 = tpu.matmul %0, %1, %cst {dimension_numbers = #tpu.dot_dimension_numbers<[1], [0], [0], [1], [0, 0, 1, 1], [], []>} : vector<8x4xf32>, vector<4x128xf32>, vector<8x128xf32> -> vector<8x128xf32>
    %c0_3 = arith.constant 0 : index
    %c0_4 = arith.constant 0 : index
    %3 = vector.load %arg3[%c0_3, %c0_4] : memref<1x128xf32, #tpu.memory_space<vmem>>, vector<1x128xf32>
    %4 = vector.broadcast %3 : vector<1x128xf32> to vector<8x128xf32>
    %5 = arith.addf %2, %4 : vector<8x128xf32>
    %cst_5 = arith.constant 0.000000e+00 : f32
    %6 = vector.broadcast %cst_5 : f32 to vector<8x128xf32>
    %7 = arith.maximumf %5, %6 : vector<8x128xf32>
    %c0_6 = arith.constant 0 : index
    %c0_7 = arith.constant 0 : index
    %8 = vector.load %arg4[%c0_6, %c0_7] : memref<128x2xf32, #tpu.memory_space<vmem>>, vector<128x2xf32>
    %cst_8 = arith.constant dense<0.000000e+00> : vector<8x2xf32>
    %9 = tpu.matmul %7, %8, %cst_8 {dimension_numbers = #tpu.dot_dimension_numbers<[1], [0], [0], [1], [0, 0, 1, 1], [], []>} : vector<8x128xf32>, vector<128x2xf32>, vector<8x2xf32> -> vector<8x2xf32>
    %c0_9 = arith.constant 0 : index
    %c0_10 = arith.constant 0 : index
    %10 = vector.load %arg5[%c0_9, %c0_10] : memref<1x2xf32, #tpu.memory_space<vmem>>, vector<1x2xf32>
    %11 = vector.broadcast %10 : vector<1x2xf32> to vector<8x2xf32>
    %12 = arith.addf %9, %11 : vector<8x2xf32>
    %c0_11 = arith.constant 0 : index
    %c0_12 = arith.constant 0 : index
    %13 = vector.load %arg6[%c0_11, %c0_12] : memref<8x2xf32, #tpu.memory_space<vmem>>, vector<8x2xf32>
    tpu.vector_store %arg6[%c0_11, %c0_12], %12 {strides = array<i32>} : memref<8x2xf32, #tpu.memory_space<vmem>>, vector<8x2xf32>,
    return
  }
  func.func @transform_0(%arg0: i32) -> (i32, i32) {
    %c0_i32 = arith.constant 0 : i32
    %c0_i32_0 = arith.constant 0 : i32
    return %arg0, %c0_i32 : i32, i32
  }
  func.func @transform_1(%arg0: i32) -> (i32, i32) {
    %c0_i32 = arith.constant 0 : i32
    %c0_i32_0 = arith.constant 0 : i32
    %c0_i32_1 = arith.constant 0 : i32
    return %c0_i32, %c0_i32_0 : i32, i32
  }
  func.func @transform_2(%arg0: i32) -> (i32, i32) {
    %c0_i32 = arith.constant 0 : i32
    %c0_i32_0 = arith.constant 0 : i32
    %c0_i32_1 = arith.constant 0 : i32
    return %c0_i32, %c0_i32_0 : i32, i32
  }
  func.func @transform_3(%arg0: i32) -> (i32, i32) {
    %c0_i32 = arith.constant 0 : i32
    %c0_i32_0 = arith.constant 0 : i32
    %c0_i32_1 = arith.constant 0 : i32
    return %c0_i32, %c0_i32_0 : i32, i32
  }
  func.func @transform_4(%arg0: i32) -> (i32, i32) {
    %c0_i32 = arith.constant 0 : i32
    %c0_i32_0 = arith.constant 0 : i32
    %c0_i32_1 = arith.constant 0 : i32
    return %c0_i32, %c0_i32_0 : i32, i32
  }
  func.func @transform_5(%arg0: i32) -> (i32, i32) {
    %c0_i32 = arith.constant 0 : i32
    %c0_i32_0 = arith.constant 0 : i32
    return %arg0, %c0_i32 : i32, i32
  }
}

</mosaic_0001>

<bundles_post_ra>
// kernel: tpu_custom_call.1
= control target key start
LH: loop header
LB: loop body
LE: loop exit
PB: predicated region body
PF: predicated region fallthrough
CT: control target
= control target key end

     0   :  { %10 = vsyncpa [#allocation3], 0  ;;  %vm34_vm0 = vcmask 1043456   ;;  %v310_v1 = vmov 0.0   ;;  %vm30_vm1 = vcmask 31744   ;;  %vm311_vm2 = vmmov 0   ;;  %s408_s0 = inlined_call_operand.vmem [shape: f32[2,4], index: 0, kind: input, shape index: {}]   ;;  %s409_s1 = inlined_call_operand.vmem [shape: f32[4,128], index: 1, kind: input, shape index: {}]   ;;  %s410_s2 = inlined_call_operand.vmem [shape: f32[1,128], index: 2, kind: input, shape index: {}]   ;;  %s411_s3 = inlined_call_operand.vmem [shape: f32[128,2], index: 3, kind: input, shape index: {}]   ;;  %s412_s4 = inlined_call_operand.vmem [shape: f32[1,2], index: 4, kind: input, shape index: {}]   ;;  %s413_s5 = inlined_call_operand.hbm [shape: f32[2,2], index: 5, kind: output, shape index: {}]  }
   0x1   :  { %v22_v0 = vld [vmem:[%s409_s1] sm:$0xf]  ;;  %243 = vmatprep.subr.mxu0 %v310_v1  ;;  %248 = vmatprep.subr.mxu1 %v310_v1  ;;  %v124_v3 = vld [vmem:[%s411_s3 + $0x78] sm:$0xff]  ;;  %v123_v4 = vld [vmem:[%s411_s3 + $0x70] sm:$0xff]  ;;  %vm202_vm3 = vcmask 15360  }
   0x2   :  { %v21_v2 = vld [vmem:[%s408_s0] sm:$0xff]  ;;  %244 = vmatpush3.msk.msra.mxu0 %vm34_vm0, %v22_v0  ;;  %245 = vmatprep.mubr.msk.f32.mxu0 %vm311_vm2, %v310_v1  ;;  %v122_v5 = vld [vmem:[%s411_s3 + $0x68] sm:$0xff]  ;;  %v120_v7 = vld [vmem:[%s411_s3 + $0x58] sm:$0xff] }
   0x3   :  { %246 = vmatmul.mubr.msk.f32.vlgmr.msra.gmra.mxu0 %vm30_vm1, %v21_v2  ;;  %249 = vmatpush3.msra.mxu1 %v124_v3  ;;  %v121_v6 = vld [vmem:[%s411_s3 + $0x60] sm:$0xff]  ;;  %v119_v8 = vld [vmem:[%s411_s3 + $0x50] sm:$0xff]  ;;  %v118_v9 = vld [vmem:[%s411_s3 + $0x48] sm:$0xff] }
   0x4   :  { %250 = vmatprep.subr.mxu1 %v310_v1  ;;  %280 = vmatprep.mubr.msk.f32.mxu1 %vm311_vm2, %v310_v1  ;;  %v117_v10 = vld [vmem:[%s411_s3 + $0x40] sm:$0xff]  ;;  %v116_v11 = vld [vmem:[%s411_s3 + $0x38] sm:$0xff]  ;;  %v115_v12 = vld [vmem:[%s411_s3 + $0x30] sm:$0xff] }
   0x5   :  { %251 = vmatpush3.msra.mxu1 %v123_v4  ;;  %v114_v13 = vld [vmem:[%s411_s3 + $0x28] sm:$0xff]  ;;  %v113_v14 = vld [vmem:[%s411_s3 + $0x20] sm:$0xff]  ;;  %v112_v15 = vld [vmem:[%s411_s3 + $0x18] sm:$0xff] }
   0x6   :  { %252 = vmatprep.subr.mxu1 %v310_v1  ;;  %v111_v16 = vld [vmem:[%s411_s3 + $0x10] sm:$0xff]  ;;  %v110_v17 = vld [vmem:[%s411_s3 + $0x8] sm:$0xff]  ;;  %v109_v18 = vld [vmem:[%s411_s3] sm:$0xff] }
   0x7   :  { %253 = vmatpush3.msra.mxu1 %v122_v5  ;;  %v220_v19 = vld [vmem:[%s410_s2] ss:$0 sm:$0xff] }
   0x8   :  { %254 = vmatprep.subr.mxu1 %v310_v1  ;;  %v223_v24 = vld [vmem:[%s412_s4] ss:$0 sm:$0xff] }
   0x9   :  { %255 = vmatpush3.msra.mxu1 %v121_v6 }
   0xa   :  { %256 = vmatprep.subr.mxu1 %v310_v1 }
   0xb   :  { %257 = vmatpush3.msra.mxu1 %v120_v7 }
   0xc   :  { %258 = vmatprep.subr.mxu1 %v310_v1 }
   0xd   :  { %259 = vmatpush3.msra.mxu1 %v119_v8 }
   0xe   :  { %260 = vmatprep.subr.mxu1 %v310_v1 }
   0xf   :  { %261 = vmatpush3.msra.mxu1 %v118_v9 }
  0x10   :  { %262 = vmatprep.subr.mxu1 %v310_v1 }
  0x11   :  { %263 = vmatpush3.msra.mxu1 %v117_v10 }
  0x12   :  { %264 = vmatprep.subr.mxu1 %v310_v1 }
  0x13   :  { %265 = vmatpush3.msra.mxu1 %v116_v11 }
  0x14   :  { %266 = vmatprep.subr.mxu1 %v310_v1 }
  0x15   :  { %267 = vmatpush3.msra.mxu1 %v115_v12 }
  0x16   :  { %268 = vmatprep.subr.mxu1 %v310_v1 }
  0x17   :  { %269 = vmatpush3.msra.mxu1 %v114_v13 }
  0x18   :  { %270 = vmatprep.subr.mxu1 %v310_v1 }
  0x19   :  { %271 = vmatpush3.msra.mxu1 %v113_v14 }
  0x1a   :  { %272 = vmatprep.subr.mxu1 %v310_v1 }
  0x1b   :  { %273 = vmatpush3.msra.mxu1 %v112_v15 }
  0x1c   :  { %274 = vmatprep.subr.mxu1 %v310_v1 }
  0x1d   :  { %275 = vmatpush3.msra.mxu1 %v111_v16 }
  0x1e   :  { %276 = vmatprep.subr.mxu1 %v310_v1 }
  0x1f   :  { %277 = vmatpush3.msra.mxu1 %v110_v17 }
  0x20   :  { %278 = vmatprep.subr.mxu1 %v310_v1 }
  0x21   :  { %279 = vmatpush3.msra.mxu1 %v109_v18 }
  0xc3   :  { %v104_v20 = vpop.f32.mrf.mxu0 }
  0xc4   :  { %v105_v21 = vadd.f32 %v220_v19, %v104_v20 }
  0xc5   :  { %v247_v22 = vpop.f32.mrf.mxu0 }
  0xc6   :  { %v108_v23 = vmax.f32 %v105_v21, 0.0 }
  0xc8   :  { %281 = vmatmul.mubr.f32.vlgmr.msra.gmra.mxu1 %v108_v23 }
 0x188   :  { %v198_v25 = vpop.f32.mrf.mxu1 }
 0x189   :  { %v199_v26 = vadd.f32 %v223_v24, %v198_v25 }
 0x18a   :  { %v282_v27 = vpop.f32.mrf.mxu1 }
 0x18b   :  { %203 = vst.msk [vmem:[#allocation2] sm:$0xff] %vm202_vm3, %v199_v26 }
 0x18c   :  { %208 = vsyncadd [#allocation3], 96  ;;  %s312_s3 = smov [#allocation2]  }
 0x18d   :  { %s209_s29 = sshll.u32 %s312_s3, 4  ;;  %s210_s29 = int_to_ptr.vmem [resolvable:$true] %s209_s29 }
 0x18e   :  { %s288_s30 = scalar_lea.vmem %s210_s29, 32  ;;  %s292_s2 = scalar_lea.vmem %s210_s29, 128 }
 0x18f   :  { %p289_p0 = scmp.ne.s32.totalorder %s210_s29, %s288_s30  ;;  %p293_p1 = scmp.lt.s32.totalorder %s210_s29, %s210_s29 }
 0x190   :  { %p294_p2 = scmp.lt.s32.totalorder %s292_s2, %s288_s30 }
 0x192   :  { %p295_p3 = por %p294_p2, %p293_p1 }
 0x194   :  { %p296_p4 = pnand %p295_p3, %p289_p0 }
 0x196   :  { %299 = shalt.err (!%p296_p4)
}
 0x197   :  { %s313_s6 = smov 32   ;;  %s314_s7 = smov 2  }
 0x198   :  { %215 = dma.vmem_to_hbm [thread:$0]  %s210_s29, 32, %s413_s5, [#allocation3], %s313_s6, %s313_s6, %s314_s7  }
 0x199   :  { %308 = dma.done.wait [#allocation3], 128  }
 0x19a   :  { %309 = vsyncadd [#allocation3], 4294967168 }
 0x19b   :  { %219 = vsyncpa [#allocation3], 1 }

</bundles_post_ra>
